<compile_context>
chip_gen: v7x
topology: tpu7x:2x2x1
jax: 0.10.0
libtpu: 0.0.40
codegen_flags: <defaults>
</compile_context>

<pallas_src>
import functools

import jax
import jax.numpy as jnp
from jax import lax
from jax.experimental import pallas as pl
from jax.experimental.pallas import tpu as pltpu


# ------------------------------ small helpers ------------------------------ #

def _round_up(x, m):
    return (x + m - 1) // m * m


def _tpu_vmem_capacity():
    try:
        return int(pltpu.get_tpu_info().vmem_capacity_bytes)
    except Exception:
        return 64 << 20            # conservative fallback: v7x per-core VMEM


def _vmem_limit_bytes(cap):
    return int(max(32 << 20, min(cap * 3 // 4, 96 << 20)))


def bn_fold(gamma, beta, mean, var, eps=1e-5):
    scale = gamma / jnp.sqrt(var + eps)
    bias = beta - mean * scale
    return (scale.reshape(1, -1).astype(jnp.float32),
            bias.reshape(1, -1).astype(jnp.float32))


# --------------------------------- kernels --------------------------------- #

def _build_tap_conv_kernel(*, Wp, Ho, cdt, res_mode, res_off, relu):
    """Fused 3x3 stride-1 conv (+BN folded) (+shortcut) (+ReLU).

    Per image (flat row = padded_row * Wp + padded_col) the output covers the
    (Ho, Wp) grid; tap (kh, kw) is the contiguous row window
    [kh*Wp+kw, kh*Wp+kw + Ho*Wp), so the conv is 9 shifted matmuls with the
    (9, Cin, Cout) weights resident in VMEM.  Epilogue: + folded BN bias,
    + optional shortcut (f32 add for identity, small matmul for the 1x1-conv
    projection), ReLU.  The last two columns of every row are garbage and are
    sliced off by the wrapper.
    """
    R_out = Ho * Wp

    def _compute(x_ref, w_ref, b_ref, r_ref, wr_ref, o_ref):
        tb = x_ref.shape[0]
        cout = o_ref.shape[-1]

        def one_image(b):
            xb = x_ref[b]                                   # (R_in, Cin)
            acc = jnp.zeros((R_out, cout), jnp.float32)
            for kh in range(3):
                for kw in range(3):
                    off = kh * Wp + kw
                    tap = xb[off:off + R_out, :].astype(cdt)
                    acc = acc + jnp.dot(tap, w_ref[kh * 3 + kw],
                                        preferred_element_type=jnp.float32)
            if res_mode == "add":        # identity shortcut: f32 VPU add
                acc = acc + r_ref[b][res_off:res_off + R_out, :].astype(
                    jnp.float32)
            elif res_mode == "proj":     # 1x1-conv projection shortcut
                acc = acc + jnp.dot(r_ref[b].astype(cdt), wr_ref[...],
                                    preferred_element_type=jnp.float32)
            out = acc + b_ref[...]
            if relu:
                out = jnp.maximum(out, 0.0)
            o_ref[b] = out.astype(o_ref.dtype)

        if tb <= 8:                      # fully unrolled for small blocks
            for b in range(tb):
                one_image(b)
        else:
            def body(b, carry):
                one_image(b)
                return carry
            lax.fori_loop(0, tb, body, 0)

    if res_mode is None:
        def kernel(x_ref, w_ref, b_ref, o_ref):
            _compute(x_ref, w_ref, b_ref, None, None, o_ref)
    elif res_mode == "add":
        def kernel(x_ref, w_ref, b_ref, r_ref, o_ref):
            _compute(x_ref, w_ref, b_ref, r_ref, None, o_ref)
    else:
        def kernel(x_ref, w_ref, b_ref, r_ref, wr_ref, o_ref):
            _compute(x_ref, w_ref, b_ref, r_ref, wr_ref, o_ref)
    return kernel


def _mm_bias_act_kernel(x_ref, w_ref, b_ref, o_ref, *, relu):
    """out = relu?(x @ w + bias); BN scale pre-folded into w."""
    acc = jnp.dot(x_ref[...], w_ref[...], preferred_element_type=jnp.float32)
    out = acc + b_ref[...]
    if relu:
        out = jnp.maximum(out, 0.0)
    o_ref[...] = out.astype(o_ref.dtype)


# --------------------------- pallas_call wrappers --------------------------- #

def tap_conv(x_flat, w9, bias, *, Ho, Wp, out_dtype, cdt, relu=True,
             residual=None):
    """Batch-block-tiled fused 3x3 stride-1 conv.

    x_flat:   (N, R_in, Cin)  spatially padded, flattened NHWC activations
    w9:       (9, Cin, Cout)  per-tap weights (BN scale folded), compute dtype
    bias:     (1, Cout)       folded BN bias (f32)
    residual: None | ("add", r_flat, row_offset) | ("proj", r_flat, w_res)
    Returns (N, Ho*Wp, Cout) in out_dtype.
    """
    N, R_in, Cin = x_flat.shape
    Cout = w9.shape[-1]
    R_out = Ho * Wp

    cap = _tpu_vmem_capacity()
    budget = max(8 << 20, cap // 4)
    per_img = (R_in * Cin * x_flat.dtype.itemsize
               + R_out * Cout * jnp.dtype(out_dtype).itemsize)
    if residual is not None:
        r_arr = residual[1]
        per_img += r_arr.shape[1] * r_arr.shape[2] * r_arr.dtype.itemsize
    tb = max(1, min(N, budget // max(2 * per_img, 1)))
    if N >= 2:                           # keep both v7x TensorCores busy
        tb = min(tb, max(1, N // 2))
    while N % tb:                        # avoid a ragged trailing batch block
        tb -= 1

    in_specs = [
        pl.BlockSpec((tb, R_in, Cin), lambda i: (i, 0, 0)),
        pl.BlockSpec(w9.shape, lambda i: (0, 0, 0)),       # resident weights
        pl.BlockSpec(bias.shape, lambda i: (0, 0)),        # resident bias
    ]
    args = [x_flat, w9, bias]
    res_mode, res_off = None, 0
    if residual is not None:
        res_mode, r_arr = residual[0], residual[1]
        in_specs.append(
            pl.BlockSpec((tb,) + r_arr.shape[1:], lambda i: (i, 0, 0)))
        args.append(r_arr)
        if res_mode == "add":
            res_off = residual[2]
        else:
            w_res = residual[2]
            in_specs.append(pl.BlockSpec(w_res.shape, lambda i: (0, 0)))
            args.append(w_res)

    kernel = _build_tap_conv_kernel(Wp=Wp, Ho=Ho, cdt=cdt, res_mode=res_mode,
                                    res_off=res_off, relu=relu)
    return pl.pallas_call(
        kernel,
        out_shape=jax.ShapeDtypeStruct((N, R_out, Cout), out_dtype),
        grid=(N // tb,),
        in_specs=in_specs,
        out_specs=pl.BlockSpec((tb, R_out, Cout), lambda i: (i, 0, 0)),
        compiler_params=pltpu.CompilerParams(
            dimension_semantics=("parallel",),
            vmem_limit_bytes=_vmem_limit_bytes(cap)),
    )(*args)


def matmul_bias_act(x2d, w2d, bias, *, out_dtype, relu=True):
    """Row-tiled fused GEMM + bias + ReLU (stride-2 conv1 fallback path)."""
    M, K = x2d.shape
    C = w2d.shape[1]
    cap = _tpu_vmem_capacity()
    budget = max(8 << 20, cap // 4)
    bytes_per_row = K * x2d.dtype.itemsize + C * jnp.dtype(out_dtype).itemsize
    tm = 1024
    while tm > 128 and 2 * tm * bytes_per_row > budget:
        tm //= 2
    if M > 32:                           # >= 2 grid steps (v7x: 2 TensorCores)
        tm = min(tm, _round_up(pl.cdiv(M, 2), 16))
    tm = min(tm, _round_up(M, 16))
    tm = _round_up(tm, 128) if tm >= 128 else max(16, _round_up(tm, 16))

    return pl.pallas_call(
        functools.partial(_mm_bias_act_kernel, relu=relu),
        out_shape=jax.ShapeDtypeStruct((M, C), out_dtype),
        grid=(pl.cdiv(M, tm),),
        in_specs=[pl.BlockSpec((tm, K), lambda i: (i, 0)),
                  pl.BlockSpec((K, C), lambda i: (0, 0)),
                  pl.BlockSpec((1, C), lambda i: (0, 0))],
        out_specs=pl.BlockSpec((tm, C), lambda i: (i, 0)),
        compiler_params=pltpu.CompilerParams(
            dimension_semantics=("parallel",),
            vmem_limit_bytes=_vmem_limit_bytes(cap)),
    )(x2d, w2d, bias)


# ------------------------------- JAX glue ----------------------------------- #

def w_oihw_to_taps(w, scale):
    """(Cout, Cin, 3, 3) -> (9, Cin, Cout), BN scale folded in."""
    cout, cin = w.shape[:2]
    return jnp.transpose(w, (2, 3, 1, 0)).reshape(9, cin, cout) * scale


def w_oihw_to_mat(w, scale):
    """(Cout, Cin, KH, KW) -> (KH*KW*Cin, Cout), im2col column order."""
    cout, cin, kh, kw = w.shape
    return jnp.transpose(w, (2, 3, 1, 0)).reshape(kh * kw * cin, cout) * scale


def pad_flatten(x_nhwc):
    """Zero-pad H by (1,2) and W by (1,1), flatten spatial dims.

    The extra bottom row keeps every shifted row-window of the flat layout in
    bounds (the overhang only feeds garbage output columns).
    """
    N, H, W, C = x_nhwc.shape
    xp = jnp.pad(x_nhwc, ((0, 0), (1, 2), (1, 1), (0, 0)))
    return xp.reshape(N, (H + 3) * (W + 2), C)


def im2col_3x3(x_nhwc, stride):
    """3x3 / padding=1 im2col (only used for the stride!=1 conv1)."""
    N, H, W, C = x_nhwc.shape
    xp = jnp.pad(x_nhwc, ((0, 0), (1, 1), (1, 1), (0, 0)))
    Ho = (H - 1) // stride + 1
    Wo = (W - 1) // stride + 1
    cols = [xp[:, kh:kh + (Ho - 1) * stride + 1:stride,
               kw:kw + (Wo - 1) * stride + 1:stride, :]
            for kh in range(3) for kw in range(3)]
    patches = jnp.concatenate(cols, axis=-1)           # (N, Ho, Wo, 9*C)
    return patches.reshape(N * Ho * Wo, 9 * C), (Ho, Wo)


def basic_block_forward(x_nchw, params, stride, *, compute_dtype=jnp.bfloat16):
    cdt = compute_dtype
    x = jnp.transpose(x_nchw, (0, 2, 3, 1)).astype(jnp.float32)   # NHWC f32
    N, H, W, Cin = x.shape
    planes = params["conv1_w"].shape[0]
    Ho = (H - 1) // stride + 1
    Wo = (W - 1) // stride + 1
    Wp2 = Wo + 2

    s1, b1 = bn_fold(params["bn1_gamma"], params["bn1_beta"],
                     params["bn1_mean"], params["bn1_var"])
    s2, b2 = bn_fold(params["bn2_gamma"], params["bn2_beta"],
                     params["bn2_mean"], params["bn2_var"])

    # ---- conv1 (3x3, stride) + bn1 + relu --------------------------------- #
    x_flat = None
    if stride == 1:
        Wp1 = W + 2
        x_flat = pad_flatten(x)                          # f32, read once
        w9_1 = w_oihw_to_taps(params["conv1_w"], s1).astype(cdt)
        out1_raw = tap_conv(x_flat, w9_1, b1, Ho=Ho, Wp=Wp1,
                            out_dtype=cdt, cdt=cdt, relu=True)
        out1 = out1_raw.reshape(N, Ho, Wp1, planes)[:, :, :Wo, :]
    else:
        # TODO(synk): stride-2 conv1 still uses a small wrapper-side im2col.
        patches, _ = im2col_3x3(x, stride)
        w1m = w_oihw_to_mat(params["conv1_w"], s1).astype(cdt)
        out1_2d = matmul_bias_act(patches.astype(cdt), w1m, b1,
                                  out_dtype=cdt, relu=True)
        out1 = out1_2d.reshape(N, Ho, Wo, planes)

    # conv2 input: zero-pad spatially and flatten (small compute-dtype pass).
    c2_in = pad_flatten(out1)                            # (N, (Ho+3)*Wp2, planes)

    # ---- shortcut operands ------------------------------------------------- #
    if stride != 1 or Cin != planes:
        ss, bs = bn_fold(params["bns_gamma"], params["bns_beta"],
                         params["bns_mean"], params["bns_var"])
        w_res = (jnp.transpose(params["convs_w"].reshape(planes, Cin)) * ss
                 ).astype(cdt)                           # (Cin, planes)
        xs = x[:, ::stride, ::stride, :]                 # (N, Ho, Wo, Cin)
        xs_flat = jnp.pad(xs, ((0, 0), (0, 0), (0, 2), (0, 0))
                          ).reshape(N, Ho * Wp2, Cin).astype(cdt)
        residual = ("proj", xs_flat, w_res)
        bias2 = b2 + bs
    else:
        # Identity shortcut: f32 add, read straight from the padded block
        # input (no eye-matmul, no extra HBM array, no bf16 rounding).
        residual = ("add", x_flat, Wp2 + 1)
        bias2 = b2

    # ---- conv2 (3x3, s=1) + bn2 + shortcut + add + relu : one kernel ------- #
    w9_2 = w_oihw_to_taps(params["conv2_w"], s2).astype(cdt)
    out2_raw = tap_conv(c2_in, w9_2, bias2, Ho=Ho, Wp=Wp2,
                        out_dtype=jnp.float32, cdt=cdt, relu=True,
                        residual=residual)
    out = out2_raw.reshape(N, Ho, Wp2, planes)[:, :, :Wo, :]
    return jnp.transpose(out, (0, 3, 1, 2))              # back to NCHW


# ----------------------- pure-JAX reference (NCHW) -------------------------- #

def ref_forward(x, params, stride, eps=1e-5):
    def conv(x, w, s, pad):
        return jax.lax.conv_general_dilated(
            x, w, (s, s), [(pad, pad), (pad, pad)],
            dimension_numbers=("NCHW", "OIHW", "NCHW"))

    def bn(x, g, b, m, v):
        rs = lambda a: a.reshape(1, -1, 1, 1)
        return (x - rs(m)) / jnp.sqrt(rs(v) + eps) * rs(g) + rs(b)

    out = jax.nn.relu(bn(conv(x, params["conv1_w"], stride, 1),
                         params["bn1_gamma"], params["bn1_beta"],
                         params["bn1_mean"], params["bn1_var"]))
    out = bn(conv(out, params["conv2_w"], 1, 1),
             params["bn2_gamma"], params["bn2_beta"],
             params["bn2_mean"], params["bn2_var"])
    in_planes = x.shape[1]
    planes = params["conv1_w"].shape[0]
    if stride != 1 or in_planes != planes:
        sc = bn(conv(x, params["convs_w"], stride, 0),
                params["bns_gamma"], params["bns_beta"],
                params["bns_mean"], params["bns_var"])
    else:
        sc = x
    return jax.nn.relu(out + sc)


# ---------------------------------- main ------------------------------------ #

def make_params(key, in_planes, planes):
    ks = jax.random.split(key, 15)
    return {
        "conv1_w": 0.1 * jax.random.normal(ks[0], (planes, in_planes, 3, 3), jnp.float32),
        "conv2_w": 0.1 * jax.random.normal(ks[1], (planes, planes, 3, 3), jnp.float32),
        "convs_w": 0.1 * jax.random.normal(ks[2], (planes, in_planes, 1, 1), jnp.float32),
        "bn1_gamma": 1.0 + 0.1 * jax.random.normal(ks[3], (planes,), jnp.float32),
        "bn1_beta": 0.1 * jax.random.normal(ks[4], (planes,), jnp.float32),
        "bn1_mean": 0.1 * jax.random.normal(ks[5], (planes,), jnp.float32),
        "bn1_var": jax.random.uniform(ks[6], (planes,), jnp.float32, 0.5, 1.5),
        "bn2_gamma": 1.0 + 0.1 * jax.random.normal(ks[7], (planes,), jnp.float32),
        "bn2_beta": 0.1 * jax.random.normal(ks[8], (planes,), jnp.float32),
        "bn2_mean": 0.1 * jax.random.normal(ks[9], (planes,), jnp.float32),
        "bn2_var": jax.random.uniform(ks[10], (planes,), jnp.float32, 0.5, 1.5),
        "bns_gamma": 1.0 + 0.1 * jax.random.normal(ks[11], (planes,), jnp.float32),
        "bns_beta": 0.1 * jax.random.normal(ks[12], (planes,), jnp.float32),
        "bns_mean": 0.1 * jax.random.normal(ks[13], (planes,), jnp.float32),
        "bns_var": jax.random.uniform(ks[14], (planes,), jnp.float32, 0.5, 1.5),
    }


if __name__ == "__main__":
    key = jax.random.PRNGKey(0)
    k_p1, k_p2, k_x1, k_x2 = jax.random.split(key, 4)

    # Test 1: downsample block (stride=2, Cin != planes) -> im2col conv1 +
    # fused tap-conv2 with projection shortcut, f32 compute (tight tolerance).
    in_planes, planes, stride = 4, 8, 2
    N, H, W = 2, 16, 16
    params1 = make_params(k_p1, in_planes, planes)
    x1 = jax.random.normal(k_x1, (N, in_planes, H, W), jnp.float32)

    fwd_f32 = jax.jit(functools.partial(
        basic_block_forward, stride=stride, compute_dtype=jnp.float32))
    out1 = jax.block_until_ready(fwd_f32(x1, params1))
    ref1 = jax.block_until_ready(ref_forward(x1, params1, stride))
    assert out1.shape == (N, planes, H // stride, W // stride), out1.shape
    assert jnp.allclose(out1, ref1, atol=2e-3, rtol=2e-3), \
        float(jnp.max(jnp.abs(out1 - ref1)))

    # Test 2: identity-shortcut block (stride=1, Cin == planes) -> fully fused
    # tap convs, bf16 compute with f32 accumulation and f32 residual add.
    in_planes2 = planes2 = 8
    params2 = make_params(k_p2, in_planes2, planes2)
    x2 = jax.random.normal(k_x2, (N, in_planes2, H, W), jnp.float32)

    fwd_bf16 = jax.jit(functools.partial(
        basic_block_forward, stride=1, compute_dtype=jnp.bfloat16))
    out2 = jax.block_until_ready(fwd_bf16(x2, params2))
    ref2 = jax.block_until_ready(ref_forward(x2, params2, 1))
    assert out2.shape == (N, planes2, H, W), out2.shape
    assert jnp.allclose(out2, ref2, atol=5e-2, rtol=5e-2), \
        float(jnp.max(jnp.abs(out2 - ref2)))

    print("KERNEL_OK")
</pallas_src>

<mosaic_0001>
module attributes {stable_mosaic.version = 11 : i64} {
  func.func @_mm_bias_act_kernel(%arg0: i32, %arg1: memref<64x36xf32, #tpu.memory_space<vmem>>, %arg2: memref<36x8xf32, #tpu.memory_space<vmem>>, %arg3: memref<1x8xf32, #tpu.memory_space<vmem>>, %arg4: memref<64x8xf32, #tpu.memory_space<vmem>>) attributes {dimension_semantics = [#tpu.dimension_semantics<parallel>], iteration_bounds = array<i64: 2>, scalar_prefetch = 0 : i64, scratch_operands = 0 : i64, tpu.core_type = #tpu.core_type<tc>, window_params = [{transform_indices = @transform_0, window_bounds = array<i64: 64, 36>}, {pipeline_mode = #tpu.pipeline_mode<synchronous>, transform_indices = @transform_1, window_bounds = array<i64: 36, 8>}, {pipeline_mode = #tpu.pipeline_mode<synchronous>, transform_indices = @transform_2, window_bounds = array<i64: 1, 8>}, {transform_indices = @transform_3, window_bounds = array<i64: 64, 8>}]} {
    %c0 = arith.constant 0 : index
    %c0_0 = arith.constant 0 : index
    %0 = vector.load %arg1[%c0, %c0_0] : memref<64x36xf32, #tpu.memory_space<vmem>>, vector<64x36xf32>
    %c0_1 = arith.constant 0 : index
    %c0_2 = arith.constant 0 : index
    %1 = vector.load %arg2[%c0_1, %c0_2] : memref<36x8xf32, #tpu.memory_space<vmem>>, vector<36x8xf32>
    %cst = arith.constant dense<0.000000e+00> : vector<64x8xf32>
    %2 = tpu.matmul %0, %1, %cst {dimension_numbers = #tpu.dot_dimension_numbers<[1], [0], [0], [1], [0, 0, 1, 1], [], []>} : vector<64x36xf32>, vector<36x8xf32>, vector<64x8xf32> -> vector<64x8xf32>
    %c0_3 = arith.constant 0 : index
    %c0_4 = arith.constant 0 : index
    %3 = vector.load %arg3[%c0_3, %c0_4] : memref<1x8xf32, #tpu.memory_space<vmem>>, vector<1x8xf32>
    %4 = vector.broadcast %3 : vector<1x8xf32> to vector<64x8xf32>
    %5 = arith.addf %2, %4 : vector<64x8xf32>
    %cst_5 = arith.constant 0.000000e+00 : f32
    %6 = vector.broadcast %cst_5 : f32 to vector<64x8xf32>
    %7 = arith.maximumf %5, %6 : vector<64x8xf32>
    %c0_6 = arith.constant 0 : index
    %c0_7 = arith.constant 0 : index
    %8 = vector.load %arg4[%c0_6, %c0_7] : memref<64x8xf32, #tpu.memory_space<vmem>>, vector<64x8xf32>
    tpu.vector_store %arg4[%c0_6, %c0_7], %7 {strides = array<i32>} : memref<64x8xf32, #tpu.memory_space<vmem>>, vector<64x8xf32>,
    return
  }
  func.func @transform_0(%arg0: i32) -> (i32, i32) {
    %c0_i32 = arith.constant 0 : i32
    %c0_i32_0 = arith.constant 0 : i32
    return %arg0, %c0_i32 : i32, i32
  }
  func.func @transform_1(%arg0: i32) -> (i32, i32) {
    %c0_i32 = arith.constant 0 : i32
    %c0_i32_0 = arith.constant 0 : i32
    %c0_i32_1 = arith.constant 0 : i32
    return %c0_i32, %c0_i32_0 : i32, i32
  }
  func.func @transform_2(%arg0: i32) -> (i32, i32) {
    %c0_i32 = arith.constant 0 : i32
    %c0_i32_0 = arith.constant 0 : i32
    %c0_i32_1 = arith.constant 0 : i32
    return %c0_i32, %c0_i32_0 : i32, i32
  }
  func.func @transform_3(%arg0: i32) -> (i32, i32) {
    %c0_i32 = arith.constant 0 : i32
    %c0_i32_0 = arith.constant 0 : i32
    return %arg0, %c0_i32 : i32, i32
  }
}

module attributes {stable_mosaic.version = 11 : i64} {
  func.func @kernel(%arg0: i32, %arg1: memref<1x110x8xf32, #tpu.memory_space<vmem>>, %arg2: memref<9x8x8xf32, #tpu.memory_space<vmem>>, %arg3: memref<1x8xf32, #tpu.memory_space<vmem>>, %arg4: memref<1x80x4xf32, #tpu.memory_space<vmem>>, %arg5: memref<4x8xf32, #tpu.memory_space<vmem>>, %arg6: memref<1x80x8xf32, #tpu.memory_space<vmem>>) attributes {dimension_semantics = [#tpu.dimension_semantics<parallel>], iteration_bounds = array<i64: 2>, scalar_prefetch = 0 : i64, scratch_operands = 0 : i64, tpu.core_type = #tpu.core_type<tc>, window_params = [{transform_indices = @transform_0, window_bounds = array<i64: 1, 110, 8>}, {pipeline_mode = #tpu.pipeline_mode<synchronous>, transform_indices = @transform_1, window_bounds = array<i64: 9, 8, 8>}, {pipeline_mode = #tpu.pipeline_mode<synchronous>, transform_indices = @transform_2, window_bounds = array<i64: 1, 8>}, {transform_indices = @transform_3, window_bounds = array<i64: 1, 80, 4>}, {pipeline_mode = #tpu.pipeline_mode<synchronous>, transform_indices = @transform_4, window_bounds = array<i64: 4, 8>}, {transform_indices = @transform_5, window_bounds = array<i64: 1, 80, 8>}]} {
    %c0 = arith.constant 0 : index
    %c0_0 = arith.constant 0 : index
    %c0_1 = arith.constant 0 : index
    %0 = vector.load %arg1[%c0, %c0_0, %c0_1] : memref<1x110x8xf32, #tpu.memory_space<vmem>>, vector<1x110x8xf32>
    %1 = vector.shape_cast %0 : vector<1x110x8xf32> to vector<110x8xf32>
    %cst = arith.constant 0.000000e+00 : f32
    %2 = vector.broadcast %cst : f32 to vector<80x8xf32>
    %3 = vector.extract_strided_slice %1 {offsets = [0, 0], sizes = [80, 8], strides = [1, 1]} : vector<110x8xf32> to vector<80x8xf32>
    %c0_2 = arith.constant 0 : index
    %c0_3 = arith.constant 0 : index
    %c0_4 = arith.constant 0 : index
    %4 = vector.load %arg2[%c0_2, %c0_3, %c0_4] : memref<9x8x8xf32, #tpu.memory_space<vmem>>, vector<1x8x8xf32>
    %5 = vector.shape_cast %4 : vector<1x8x8xf32> to vector<8x8xf32>
    %cst_5 = arith.constant dense<0.000000e+00> : vector<80x8xf32>
    %6 = tpu.matmul %3, %5, %cst_5 {dimension_numbers = #tpu.dot_dimension_numbers<[1], [0], [0], [1], [0, 0, 1, 1], [], []>} : vector<80x8xf32>, vector<8x8xf32>, vector<80x8xf32> -> vector<80x8xf32>
    %7 = arith.addf %2, %6 : vector<80x8xf32>
    %8 = vector.extract_strided_slice %1 {offsets = [1, 0], sizes = [80, 8], strides = [1, 1]} : vector<110x8xf32> to vector<80x8xf32>
    %c1 = arith.constant 1 : index
    %c0_6 = arith.constant 0 : index
    %c0_7 = arith.constant 0 : index
    %9 = vector.load %arg2[%c1, %c0_6, %c0_7] : memref<9x8x8xf32, #tpu.memory_space<vmem>>, vector<1x8x8xf32>
    %10 = vector.shape_cast %9 : vector<1x8x8xf32> to vector<8x8xf32>
    %cst_8 = arith.constant dense<0.000000e+00> : vector<80x8xf32>
    %11 = tpu.matmul %8, %10, %cst_8 {dimension_numbers = #tpu.dot_dimension_numbers<[1], [0], [0], [1], [0, 0, 1, 1], [], []>} : vector<80x8xf32>, vector<8x8xf32>, vector<80x8xf32> -> vector<80x8xf32>
    %12 = arith.addf %7, %11 : vector<80x8xf32>
    %13 = vector.extract_strided_slice %1 {offsets = [2, 0], sizes = [80, 8], strides = [1, 1]} : vector<110x8xf32> to vector<80x8xf32>
    %c2 = arith.constant 2 : index
    %c0_9 = arith.constant 0 : index
    %c0_10 = arith.constant 0 : index
    %14 = vector.load %arg2[%c2, %c0_9, %c0_10] : memref<9x8x8xf32, #tpu.memory_space<vmem>>, vector<1x8x8xf32>
    %15 = vector.shape_cast %14 : vector<1x8x8xf32> to vector<8x8xf32>
    %cst_11 = arith.constant dense<0.000000e+00> : vector<80x8xf32>
    %16 = tpu.matmul %13, %15, %cst_11 {dimension_numbers = #tpu.dot_dimension_numbers<[1], [0], [0], [1], [0, 0, 1, 1], [], []>} : vector<80x8xf32>, vector<8x8xf32>, vector<80x8xf32> -> vector<80x8xf32>
    %17 = arith.addf %12, %16 : vector<80x8xf32>
    %18 = vector.extract_strided_slice %1 {offsets = [10, 0], sizes = [80, 8], strides = [1, 1]} : vector<110x8xf32> to vector<80x8xf32>
    %c3 = arith.constant 3 : index
    %c0_12 = arith.constant 0 : index
    %c0_13 = arith.constant 0 : index
    %19 = vector.load %arg2[%c3, %c0_12, %c0_13] : memref<9x8x8xf32, #tpu.memory_space<vmem>>, vector<1x8x8xf32>
    %20 = vector.shape_cast %19 : vector<1x8x8xf32> to vector<8x8xf32>
    %cst_14 = arith.constant dense<0.000000e+00> : vector<80x8xf32>
    %21 = tpu.matmul %18, %20, %cst_14 {dimension_numbers = #tpu.dot_dimension_numbers<[1], [0], [0], [1], [0, 0, 1, 1], [], []>} : vector<80x8xf32>, vector<8x8xf32>, vector<80x8xf32> -> vector<80x8xf32>
    %22 = arith.addf %17, %21 : vector<80x8xf32>
    %23 = vector.extract_strided_slice %1 {offsets = [11, 0], sizes = [80, 8], strides = [1, 1]} : vector<110x8xf32> to vector<80x8xf32>
    %c4 = arith.constant 4 : index
    %c0_15 = arith.constant 0 : index
    %c0_16 = arith.constant 0 : index
    %24 = vector.load %arg2[%c4, %c0_15, %c0_16] : memref<9x8x8xf32, #tpu.memory_space<vmem>>, vector<1x8x8xf32>
    %25 = vector.shape_cast %24 : vector<1x8x8xf32> to vector<8x8xf32>
    %cst_17 = arith.constant dense<0.000000e+00> : vector<80x8xf32>
    %26 = tpu.matmul %23, %25, %cst_17 {dimension_numbers = #tpu.dot_dimension_numbers<[1], [0], [0], [1], [0, 0, 1, 1], [], []>} : vector<80x8xf32>, vector<8x8xf32>, vector<80x8xf32> -> vector<80x8xf32>
    %27 = arith.addf %22, %26 : vector<80x8xf32>
    %28 = vector.extract_strided_slice %1 {offsets = [12, 0], sizes = [80, 8], strides = [1, 1]} : vector<110x8xf32> to vector<80x8xf32>
    %c5 = arith.constant 5 : index
    %c0_18 = arith.constant 0 : index
    %c0_19 = arith.constant 0 : index
    %29 = vector.load %arg2[%c5, %c0_18, %c0_19] : memref<9x8x8xf32, #tpu.memory_space<vmem>>, vector<1x8x8xf32>
    %30 = vector.shape_cast %29 : vector<1x8x8xf32> to vector<8x8xf32>
    %cst_20 = arith.constant dense<0.000000e+00> : vector<80x8xf32>
    %31 = tpu.matmul %28, %30, %cst_20 {dimension_numbers = #tpu.dot_dimension_numbers<[1], [0], [0], [1], [0, 0, 1, 1], [], []>} : vector<80x8xf32>, vector<8x8xf32>, vector<80x8xf32> -> vector<80x8xf32>
    %32 = arith.addf %27, %31 : vector<80x8xf32>
    %33 = vector.extract_strided_slice %1 {offsets = [20, 0], sizes = [80, 8], strides = [1, 1]} : vector<110x8xf32> to vector<80x8xf32>
    %c6 = arith.constant 6 : index
    %c0_21 = arith.constant 0 : index
    %c0_22 = arith.constant 0 : index
    %34 = vector.load %arg2[%c6, %c0_21, %c0_22] : memref<9x8x8xf32, #tpu.memory_space<vmem>>, vector<1x8x8xf32>
    %35 = vector.shape_cast %34 : vector<1x8x8xf32> to vector<8x8xf32>
    %cst_23 = arith.constant dense<0.000000e+00> : vector<80x8xf32>
    %36 = tpu.matmul %33, %35, %cst_23 {dimension_numbers = #tpu.dot_dimension_numbers<[1], [0], [0], [1], [0, 0, 1, 1], [], []>} : vector<80x8xf32>, vector<8x8xf32>, vector<80x8xf32> -> vector<80x8xf32>
    %37 = arith.addf %32, %36 : vector<80x8xf32>
    %38 = vector.extract_strided_slice %1 {offsets = [21, 0], sizes = [80, 8], strides = [1, 1]} : vector<110x8xf32> to vector<80x8xf32>
    %c7 = arith.constant 7 : index
    %c0_24 = arith.constant 0 : index
    %c0_25 = arith.constant 0 : index
    %39 = vector.load %arg2[%c7, %c0_24, %c0_25] : memref<9x8x8xf32, #tpu.memory_space<vmem>>, vector<1x8x8xf32>
    %40 = vector.shape_cast %39 : vector<1x8x8xf32> to vector<8x8xf32>
    %cst_26 = arith.constant dense<0.000000e+00> : vector<80x8xf32>
    %41 = tpu.matmul %38, %40, %cst_26 {dimension_numbers = #tpu.dot_dimension_numbers<[1], [0], [0], [1], [0, 0, 1, 1], [], []>} : vector<80x8xf32>, vector<8x8xf32>, vector<80x8xf32> -> vector<80x8xf32>
    %42 = arith.addf %37, %41 : vector<80x8xf32>
    %43 = vector.extract_strided_slice %1 {offsets = [22, 0], sizes = [80, 8], strides = [1, 1]} : vector<110x8xf32> to vector<80x8xf32>
    %c8 = arith.constant 8 : index
    %c0_27 = arith.constant 0 : index
    %c0_28 = arith.constant 0 : index
    %44 = vector.load %arg2[%c8, %c0_27, %c0_28] : memref<9x8x8xf32, #tpu.memory_space<vmem>>, vector<1x8x8xf32>
    %45 = vector.shape_cast %44 : vector<1x8x8xf32> to vector<8x8xf32>
    %cst_29 = arith.constant dense<0.000000e+00> : vector<80x8xf32>
    %46 = tpu.matmul %43, %45, %cst_29 {dimension_numbers = #tpu.dot_dimension_numbers<[1], [0], [0], [1], [0, 0, 1, 1], [], []>} : vector<80x8xf32>, vector<8x8xf32>, vector<80x8xf32> -> vector<80x8xf32>
    %47 = arith.addf %42, %46 : vector<80x8xf32>
    %c0_30 = arith.constant 0 : index
    %c0_31 = arith.constant 0 : index
    %c0_32 = arith.constant 0 : index
    %48 = vector.load %arg4[%c0_30, %c0_31, %c0_32] : memref<1x80x4xf32, #tpu.memory_space<vmem>>, vector<1x80x4xf32>
    %49 = vector.shape_cast %48 : vector<1x80x4xf32> to vector<80x4xf32>
    %c0_33 = arith.constant 0 : index
    %c0_34 = arith.constant 0 : index
    %50 = vector.load %arg5[%c0_33, %c0_34] : memref<4x8xf32, #tpu.memory_space<vmem>>, vector<4x8xf32>
    %cst_35 = arith.constant dense<0.000000e+00> : vector<80x8xf32>
    %51 = tpu.matmul %49, %50, %cst_35 {dimension_numbers = #tpu.dot_dimension_numbers<[1], [0], [0], [1], [0, 0, 1, 1], [], []>} : vector<80x4xf32>, vector<4x8xf32>, vector<80x8xf32> -> vector<80x8xf32>
    %52 = arith.addf %47, %51 : vector<80x8xf32>
    %c0_36 = arith.constant 0 : index
    %c0_37 = arith.constant 0 : index
    %53 = vector.load %arg3[%c0_36, %c0_37] : memref<1x8xf32, #tpu.memory_space<vmem>>, vector<1x8xf32>
    %54 = vector.broadcast %53 : vector<1x8xf32> to vector<80x8xf32>
    %55 = arith.addf %52, %54 : vector<80x8xf32>
    %cst_38 = arith.constant 0.000000e+00 : f32
    %56 = vector.broadcast %cst_38 : f32 to vector<80x8xf32>
    %57 = arith.maximumf %55, %56 : vector<80x8xf32>
    %c0_39 = arith.constant 0 : index
    %c0_40 = arith.constant 0 : index
    %c0_41 = arith.constant 0 : index
    %58 = vector.load %arg6[%c0_39, %c0_40, %c0_41] : memref<1x80x8xf32, #tpu.memory_space<vmem>>, vector<1x80x8xf32>
    %59 = vector.shape_cast %58 : vector<1x80x8xf32> to vector<80x8xf32>
    %60 = vector.shape_cast %57 : vector<80x8xf32> to vector<1x80x8xf32>
    tpu.vector_store %arg6[%c0_39, %c0_40, %c0_41], %60 {strides = array<i32>} : memref<1x80x8xf32, #tpu.memory_space<vmem>>, vector<1x80x8xf32>,
    return
  }
  func.func @transform_0(%arg0: i32) -> (i32, i32, i32) {
    %c0_i32 = arith.constant 0 : i32
    %c0_i32_0 = arith.constant 0 : i32
    %c0_i32_1 = arith.constant 0 : i32
    return %arg0, %c0_i32, %c0_i32_0 : i32, i32, i32
  }
  func.func @transform_1(%arg0: i32) -> (i32, i32, i32) {
    %c0_i32 = arith.constant 0 : i32
    %c0_i32_0 = arith.constant 0 : i32
    %c0_i32_1 = arith.constant 0 : i32
    %c0_i32_2 = arith.constant 0 : i32
    return %c0_i32, %c0_i32_0, %c0_i32_1 : i32, i32, i32
  }
  func.func @transform_2(%arg0: i32) -> (i32, i32) {
    %c0_i32 = arith.constant 0 : i32
    %c0_i32_0 = arith.constant 0 : i32
    %c0_i32_1 = arith.constant 0 : i32
    return %c0_i32, %c0_i32_0 : i32, i32
  }
  func.func @transform_3(%arg0: i32) -> (i32, i32, i32) {
    %c0_i32 = arith.constant 0 : i32
    %c0_i32_0 = arith.constant 0 : i32
    %c0_i32_1 = arith.constant 0 : i32
    return %arg0, %c0_i32, %c0_i32_0 : i32, i32, i32
  }
  func.func @transform_4(%arg0: i32) -> (i32, i32) {
    %c0_i32 = arith.constant 0 : i32
    %c0_i32_0 = arith.constant 0 : i32
    %c0_i32_1 = arith.constant 0 : i32
    return %c0_i32, %c0_i32_0 : i32, i32
  }
  func.func @transform_5(%arg0: i32) -> (i32, i32, i32) {
    %c0_i32 = arith.constant 0 : i32
    %c0_i32_0 = arith.constant 0 : i32
    %c0_i32_1 = arith.constant 0 : i32
    return %arg0, %c0_i32, %c0_i32_0 : i32, i32, i32
  }
}

</mosaic_0001>

<bundles_post_ra>
// kernel: basic_block_forward.2
= control target key start
LH: loop header
LB: loop body
LE: loop exit
PB: predicated region body
PF: predicated region fallthrough
CT: control target
= control target key end

     0   :  { %s507_s12 = smov 0   ;;  %s569_s0 = inlined_call_operand.vmem [shape: f32[128,36], index: 0, kind: input, shape index: {}]   ;;  %s570_s1 = inlined_call_operand.vmem [shape: f32[36,8], index: 1, kind: input, shape index: {}]   ;;  %s571_s2 = inlined_call_operand.vmem [shape: f32[1,8], index: 2, kind: input, shape index: {}]   ;;  %s572_s3 = inlined_call_operand.vmem [shape: f32[128,8], index: 3, kind: output, shape index: {}]  }
   0x1 LB: > { %s401_s13 = sadd.s32 4294967295, %s485_s12   ;;  %p405_p0 = scmp.ge.s32.totalorder %s485_s12, 1  ;;  %s485_s12 = sphi %s507_s12, %s13_s12  }
   0x2   : > { %p138_p1 = scmp.lt.s32.totalorder %s485_s12, 3 }
   0x4   : > { %p139_p2 = pnand %p405_p0, %p138_p1 }
   0x5   : > { %v182_v0 = vld [vmem:[%s570_s1] sm:$0xff] (!%p139_p2)  ;;  %v183_v1 = vld [vmem:[%s570_s1 + $0x8] sm:$0xff] (!%p139_p2)  ;;  %v184_v2 = vld [vmem:[%s570_s1 + $0x10] sm:$0xff] (!%p139_p2)  ;;  %s406_s20 = sshll.u32 (!%p139_p2), %s401_s13, 3  ;;  %vm219_vm0 = vcmask (!%p139_p2), 1043456   ;;  %vm194_vm1 = vcmask (!%p139_p2), 293888  }
   0x6   : > { %142 = sbr.rel (%p139_p2) target bundleno = 241 (0xf1), region = 32  ;;  %v457_v3 = vpack.c.bf16 (!%p139_p2), %v183_v1, %v182_v0  ;;  %v185_v4 = vld [vmem:[%s570_s1 + $0x18] sm:$0xff] (!%p139_p2)  ;;  %p163_p3 = scmp.lt.s32.totalorder (!%p139_p2), %s406_s20, 15  ;;  %v186_v6 = vld [vmem:[%s570_s1 + $0x20] sm:$0xf] (!%p139_p2)  ;;  %vm336_vm2 = vcmask (!%p139_p2), 64512  }
   0x7   : > { %v461_v5 = vpack.c.bf16 (!%p139_p2), %v185_v4, %v184_v2  ;;  %v410_v15 = vld [vmem:[%s571_s2] ss:$0 sm:$0xff] (!%p139_p2) }
   0x8   : > { %458 = vmatprep.subr.bf16.mxu0 (!%p139_p2), %v457_v3  ;;  %465 = vmatprep.subr.bf16.mxu1 (!%p139_p2), %v457_v3 }
   0x9   : > { %460 = vmatpush3.bf16.msra.mxu0 (!%p139_p2), %v457_v3  ;;  %468 = vmatpush3.bf16.msra.mxu1 (!%p139_p2), %v457_v3 }
   0xa   : > { %462 = vmatprep.subr.bf16.mxu0 (!%p139_p2), %v461_v5  ;;  %466 = vmatprep.subr.bf16.mxu1 (!%p139_p2), %v461_v5 }
   0xd   : > { %s574_s20 = smov (!%p163_p3, %s406_s20), 15  ;;  %464 = vmatpush3.bf16.msra.mxu0 %v461_v5  ;;  %469 = vmatpush3.bf16.msra.mxu1 %v461_v5 }
   0xe   : > { %s407_s23 = sshll.u32 %s574_s20, 3  ;;  %443 = vmatprep.subr.msk.mxu0 %vm219_vm0, %v186_v6  ;;  %467 = vmatprep.subr.msk.mxu1 %vm219_vm0, %v186_v6 }
   0xf   : > { %s166_s28 = scalar_lea.vmem %s569_s0, %s407_s23  ;;  %s172_s6 = scalar_lea.vmem %s572_s3, %s407_s23 }
  0x10   : > { %v174_v7 = vld [vmem:[%s166_s28] sm:$0xff]  ;;  %v175_v9 = vld [vmem:[%s166_s28 + $0x8] sm:$0xff]  ;;  %v176_v11 = vld [vmem:[%s166_s28 + $0x10] sm:$0xff] }
  0x11   : > { %v178_v8 = vld [vmem:[%s166_s28 + $0x20] sm:$0xff]  ;;  %445 = vmatprep.mubr.msk.f32.mxu0 %vm194_vm1, %v174_v7  ;;  %v179_v10 = vld [vmem:[%s166_s28 + $0x28] sm:$0xff]  ;;  %v180_v12 = vld [vmem:[%s166_s28 + $0x30] sm:$0xff]  ;;  %444 = vmatpush3.msk.msra.mxu0 %vm219_vm0, %v186_v6 }
  0x12   : > { %451 = vmatprep.mubr.msk.f32.mxu1 %vm194_vm1, %v178_v8  ;;  %470 = vmatpush3.msk.msra.mxu1 %vm219_vm0, %v186_v6  ;;  %v177_v13 = vld [vmem:[%s166_s28 + $0x18] sm:$0xff] }
  0x13   : > { %446 = vmatmul.mubr.msk.f32.vlgmr.msra.gmra.mrb[0].mxu0 %vm194_vm1, %v175_v9  ;;  %452 = vmatmul.mubr.msk.f32.vlgmr.msra.gmra.mrb[0].mxu1 %vm194_vm1, %v179_v10  ;;  %v181_v14 = vld [vmem:[%s166_s28 + $0x38] sm:$0xff] }
  0x14   : > { %448 = vmatprep.mubr.msk.f32.mxu0 %vm194_vm1, %v176_v11  ;;  %454 = vmatprep.mubr.msk.f32.mxu1 %vm194_vm1, %v180_v12 }
  0x17   : > { %449 = vmatmul.mubr.msk.f32.gmra.mrb[2].mxu0 %vm194_vm1, %v177_v13  ;;  %455 = vmatmul.mubr.msk.f32.gmra.mrb[2].mxu1 %vm194_vm1, %v181_v14 }
  0xe6   : > { %v447_v16 = vpop.f32.mrb[0].mxu0  ;;  %v453_v17 = vpop.f32.mrb[0].mxu1 }
  0xe7   : > { %v295_v18 = vadd.f32 %v447_v16, %v410_v15  ;;  %v315_v19 = vadd.f32 %v453_v17, %v410_v15  ;;  %v289_v20 = vpop.f32.mrb[1].mxu0  ;;  %v309_v21 = vpop.f32.mrb[1].mxu1 }
  0xe8   : > { %v290_v22 = vadd.f32 %v410_v15, %v289_v20  ;;  %v310_v23 = vadd.f32 %v410_v15, %v309_v21 }
  0xe9   : > { %v329_v24 = vmax.f32 %v295_v18, 0.0  ;;  %v333_v25 = vmax.f32 %v315_v19, 0.0 }
  0xea   : > { %v328_v26 = vmax.f32 %v290_v22, 0.0  ;;  %v332_v27 = vmax.f32 %v310_v23, 0.0  ;;  %v450_v28 = vpop.f32.mrb[2].mxu0  ;;  %v456_v29 = vpop.f32.mrb[2].mxu1 }
  0xeb   : > { %338 = vst.msk [vmem:[%s172_s6 + $0x8] sm:$0xff] %vm336_vm2, %v329_v24  ;;  %342 = vst.msk [vmem:[%s172_s6 + $0x28] sm:$0xff] %vm336_vm2, %v333_v25  ;;  %v305_v30 = vadd.f32 %v450_v28, %v410_v15  ;;  %v325_v31 = vadd.f32 %v456_v29, %v410_v15  ;;  %v299_v32 = vpop.f32.mrb[3].mxu0  ;;  %v319_v33 = vpop.f32.mrb[3].mxu1 }
  0xec   : > { %337 = vst.msk [vmem:[%s172_s6] sm:$0xff] %vm336_vm2, %v328_v26  ;;  %341 = vst.msk [vmem:[%s172_s6 + $0x20] sm:$0xff] %vm336_vm2, %v332_v27  ;;  %v300_v34 = vadd.f32 %v410_v15, %v299_v32  ;;  %v320_v35 = vadd.f32 %v410_v15, %v319_v33 }
  0xed   : > { %v331_v36 = vmax.f32 %v305_v30, 0.0  ;;  %v335_v37 = vmax.f32 %v325_v31, 0.0 }
  0xee   : > { %v330_v38 = vmax.f32 %v300_v34, 0.0  ;;  %v334_v39 = vmax.f32 %v320_v35, 0.0 }
  0xef   : > { %340 = vst.msk [vmem:[%s172_s6 + $0x18] sm:$0xff] %vm336_vm2, %v331_v36  ;;  %344 = vst.msk [vmem:[%s172_s6 + $0x38] sm:$0xff] %vm336_vm2, %v335_v37 }
  0xf0   : > { %339 = vst.msk [vmem:[%s172_s6 + $0x10] sm:$0xff] %vm336_vm2, %v330_v38  ;;  %343 = vst.msk [vmem:[%s172_s6 + $0x30] sm:$0xff] %vm336_vm2, %v334_v39 }
  0xf1 PF: > { %s13_s12 = sadd.s32 1, %s485_s12  }
  0xf2   : > { %p10_p4 = scmp.ge.s32.totalorder %s13_s12, 4  }
  0xf4   :  { %12 = sbr.rel (!%p10_p4) target bundleno = 1 (0x1), region = 62 }

// kernel: basic_block_forward.3
= control target key start
LH: loop header
LB: loop body
LE: loop exit
PB: predicated region body
PF: predicated region fallthrough
CT: control target
= control target key end

     0   :  { %s2486_s18 = smov 0   ;;  %s2910_s0 = inlined_call_operand.vmem [shape: f32[2,110,8], index: 0, kind: input, shape index: {}]   ;;  %s2911_s1 = inlined_call_operand.vmem [shape: f32[9,8,8], index: 1, kind: input, shape index: {}]   ;;  %s2912_s2 = inlined_call_operand.vmem [shape: f32[1,8], index: 2, kind: input, shape index: {}]   ;;  %s2913_s3 = inlined_call_operand.vmem [shape: f32[2,80,4], index: 3, kind: input, shape index: {}]   ;;  %s2914_s4 = inlined_call_operand.vmem [shape: f32[4,8], index: 4, kind: input, shape index: {}]   ;;  %s2915_s5 = inlined_call_operand.vmem [shape: f32[2,80,8], index: 5, kind: output, shape index: {}]  }
   0x1 LB: > { %s1948_s19 = sadd.s32 4294967295, %s2454_s18   ;;  %p1952_p0 = scmp.ge.s32.totalorder %s2454_s18, 1  ;;  %s2454_s18 = sphi %s2486_s18, %s15_s18  }
   0x2   : > { %p197_p1 = scmp.lt.s32.totalorder %s2454_s18, 3 }
   0x4   : > { %p198_p2 = pnand %p1952_p0, %p197_p1 }
   0x5   : > { %v1956_v0 = vld [vmem:[%s2911_s1 + $0x8] sm:$0xff] (!%p198_p2)  ;;  %p230_p3 = scmp.lt.s32.totalorder (!%p198_p2), %s1948_s19, 1  ;;  %v258_v2 = vld [vmem:[%s2911_s1] sm:$0xff] (!%p198_p2)  ;;  %v2021_v3 = vld [vmem:[%s2911_s1 + $0x30] sm:$0xff] (!%p198_p2)  ;;  %vm272_vm0 = vcmask (!%p198_p2), 1046528   ;;  %vm294_vm1 = vcmask (!%p198_p2), 64512  }
   0x6   : > { %201 = sbr.rel (%p198_p2) target bundleno = 338 (0x152), region = 40  ;;  %v2010_v1 = vld [vmem:[%s2911_s1 + $0x28] sm:$0xff] (!%p198_p2)  ;;  %2178 = vmatprep.subr.mxu1 (!%p198_p2), %v1956_v0  ;;  %vm1037_vm2 = vcmask (!%p198_p2), 1043456   ;;  %v1977_v31 = vld [vmem:[%s2911_s1 + $0x10] sm:$0xff] (!%p198_p2)  ;;  %v2032_v32 = vld [vmem:[%s2911_s1 + $0x38] sm:$0xff] (!%p198_p2)  ;;  %vm868_vm3 = vcmask (!%p198_p2), 1044480  }
   0x7   : > { %2263 = vmatprep.subr.mxu0 (!%p198_p2), %v2010_v1  ;;  %2179 = vmatpush3.msra.mxu1 (!%p198_p2), %v1956_v0  ;;  %v2629_v60 = vld [vmem:[%s2911_s1 + $0x18] sm:$0xff] (!%p198_p2)  ;;  %v2634_v61 = vld [vmem:[%s2911_s1 + $0x40] sm:$0xff] (!%p198_p2)  ;;  %vm567_vm4 = vcmask (!%p198_p2), 1045504   ;;  %vm1338_vm5 = vcmask (!%p198_p2), 1042432   ;;  %vm1507_vm6 = vcmask (!%p198_p2), 1041408   ;;  %vm1685_vm7 = vcmask (!%p198_p2), 31744  }
   0x8   : > { %2264 = vmatpush3.msra.mxu0 (!%p198_p2), %v2010_v1  ;;  %2195 = vmatprep.subr.mxu1 (!%p198_p2), %v258_v2 }
   0x9   : > { %2280 = vmatprep.subr.mxu0 (!%p198_p2), %v2021_v3 }
   0xd   : > { %s2917_s19 = smov (!%p230_p3, %s1948_s19), 1 }
   0xe   : > { %s2438_s28 = smul.u32 112, %s2917_s19 }
   0xf   : > { %s2439_s21 = smul.u32 80, %s2917_s19 }
  0x10   : > { %s2512_s6 = scalar_lea.vmem %s2910_s0, %s2438_s28 }
  0x11   : > { %v2515_v4 = vld [vmem:[%s2512_s6] sm:$0xff]  ;;  %v2518_v5 = vld [vmem:[%s2512_s6 + $0x8] sm:$0xff]  ;;  %v2521_v6 = vld [vmem:[%s2512_s6 + $0x10] sm:$0xff]  ;;  %s2827_s24 = scalar_lea.vmem %s2913_s3, %s2439_s21  ;;  %s2885_s29 = scalar_lea.vmem %s2915_s5, %s2439_s21 }
  0x12   : > { %v273_v7 = vrot.slane %v2515_v4, 1  ;;  %v274_v8 = vrot.slane %v2518_v5, 1  ;;  %v1038_v9 = vrot.slane %v2518_v5, 4  ;;  %v1039_v10 = vrot.slane %v2521_v6, 4  ;;  %v2528_v11 = vld [vmem:[%s2512_s6 + $0x18] sm:$0xff]  ;;  %v2531_v12 = vld [vmem:[%s2512_s6 + $0x20] sm:$0xff] }
  0x13   : > { %v276_v13 = vrot.slane %v2521_v6, 1  ;;  %v1041_v14 = vrot.slane %v2528_v11, 4  ;;  %v278_v15 = vrot.slane %v2528_v11, 1  ;;  %v1043_v16 = vrot.slane %v2531_v12, 4  ;;  %v2538_v17 = vld [vmem:[%s2512_s6 + $0x28] sm:$0xff]  ;;  %v2541_v18 = vld [vmem:[%s2512_s6 + $0x30] sm:$0xff] }
  0x14   : > { %v275_v19 = vsel %vm272_vm0, %v273_v7, %v274_v8  ;;  %v1040_v20 = vsel %vm1037_vm2, %v1038_v9, %v1039_v10  ;;  %v280_v21 = vrot.slane %v2531_v12, 1  ;;  %v1045_v22 = vrot.slane %v2538_v17, 4  ;;  %v2548_v23 = vld [vmem:[%s2512_s6 + $0x38] sm:$0xff]  ;;  %v2557_v28 = vld [vmem:[%s2512_s6 + $0x40] sm:$0xff]  ;;  %v2580_v41 = vld [vmem:[%s2512_s6 + $0x48] sm:$0xff] }
  0x15   : > { %2180 = vmatprep.mubr.msk.f32.mxu1 %vm294_vm1, %v275_v19  ;;  %2265 = vmatprep.mubr.msk.f32.mxu0 %vm294_vm1, %v1040_v20  ;;  %v277_v24 = vsel %vm272_vm0, %v274_v8, %v276_v13  ;;  %v1042_v25 = vsel %vm1037_vm2, %v1039_v10, %v1041_v14  ;;  %v279_v26 = vsel %vm272_vm0, %v276_v13, %v278_v15  ;;  %v282_v27 = vrot.slane %v2538_v17, 1  ;;  %v2583_v42 = vld [vmem:[%s2512_s6 + $0x50] sm:$0xff]  ;;  %v2598_v51 = vld [vmem:[%s2512_s6 + $0x58] sm:$0xff] }
  0x16   : > { %2181 = vmatmul.mubr.msk.f32.vlgmr.msra.gmra.mrb[0].mxu1 %vm294_vm1, %v277_v24  ;;  %2266 = vmatmul.mubr.msk.f32.vlgmr.msra.gmra.mrb[0].mxu0 %vm294_vm1, %v1042_v25  ;;  %v1044_v29 = vsel %vm1037_vm2, %v1041_v14, %v1043_v16  ;;  %v1047_v30 = vrot.slane %v2541_v18, 4  ;;  %v281_v33 = vsel %vm272_vm0, %v278_v15, %v280_v21  ;;  %v1046_v34 = vsel %vm1037_vm2, %v1043_v16, %v1045_v22  ;;  %v2663_v14 = vld [vmem:[%s2512_s6 + $0x60] sm:$0xff] }
  0x17   : > { %2196 = vmatpush3.msra.mxu1 %v258_v2  ;;  %2281 = vmatpush3.msra.mxu0 %v2021_v3  ;;  %v284_v35 = vrot.slane %v2541_v18, 1  ;;  %v1049_v36 = vrot.slane %v2548_v23, 4  ;;  %v283_v37 = vsel %vm272_vm0, %v280_v21, %v282_v27  ;;  %v286_v39 = vrot.slane %v2548_v23, 1 }
  0x18   : > { %2183 = vmatprep.mubr.msk.f32.mxu1 %vm294_vm1, %v279_v26  ;;  %2268 = vmatprep.mubr.msk.f32.mxu0 %vm294_vm1, %v1044_v29  ;;  %v1048_v38 = vsel %vm1037_vm2, %v1045_v22, %v1047_v30  ;;  %v1051_v40 = vrot.slane %v2557_v28, 4  ;;  %v288_v45 = vrot.slane %v2557_v28, 1  ;;  %v1053_v46 = vrot.slane %v2580_v41, 4 }
  0x19   : > { %2212 = vmatprep.subr.mxu1 %v1977_v31  ;;  %2297 = vmatprep.subr.mxu0 %v2032_v32  ;;  %v285_v43 = vsel %vm272_vm0, %v282_v27, %v284_v35  ;;  %v1050_v44 = vsel %vm1037_vm2, %v1047_v30, %v1049_v36  ;;  %v287_v47 = vsel %vm272_vm0, %v284_v35, %v286_v39  ;;  %v290_v49 = vrot.slane %v2580_v41, 1 }
  0x1a   : > { %2184 = vmatmul.mubr.msk.f32.gmra.mrb[2].mxu1 %vm294_vm1, %v281_v33  ;;  %2269 = vmatmul.mubr.msk.f32.gmra.mrb[2].mxu0 %vm294_vm1, %v1046_v34  ;;  %v1052_v48 = vsel %vm1037_vm2, %v1049_v36, %v1051_v40  ;;  %v1055_v50 = vrot.slane %v2583_v42, 4  ;;  %v289_v52 = vsel %vm272_vm0, %v286_v39, %v288_v45  ;;  %v1054_v53 = vsel %vm1037_vm2, %v1051_v40, %v1053_v46 }
  0x1b   : > { %2186 = vmatprep.mubr.msk.f32.mxu1 %vm294_vm1, %v283_v37  ;;  %2271 = vmatprep.mubr.msk.f32.mxu0 %vm294_vm1, %v1048_v38  ;;  %v292_v54 = vrot.slane %v2583_v42, 1  ;;  %v1057_v55 = vrot.slane %v2598_v51, 4  ;;  %v291_v56 = vsel %vm272_vm0, %v288_v45, %v290_v49  ;;  %v869_v62 = vrot.slane %v2518_v5, 3 }
  0x1c   : > { %v1056_v57 = vsel %vm1037_vm2, %v1053_v46, %v1055_v50  ;;  %v870_v63 = vrot.slane %v2521_v6, 3  ;;  %v872_v0 = vrot.slane %v2528_v11, 3  ;;  %v874_v2 = vrot.slane %v2531_v12, 3 }
  0x1d   : > { %v293_v58 = vsel %vm272_vm0, %v290_v49, %v292_v54  ;;  %v1058_v59 = vsel %vm1037_vm2, %v1055_v50, %v1057_v55  ;;  %v876_v3 = vrot.slane %v2538_v17, 3  ;;  %v878_v7 = vrot.slane %v2541_v18, 3  ;;  %v1999_v49 = vld [vmem:[%s2911_s1 + $0x20] sm:$0xff] }
  0x1e   : > { %2187 = vmatmul.mubr.msk.f32.gmra.mrb[4].mxu1 %vm294_vm1, %v285_v43  ;;  %2272 = vmatmul.mubr.msk.f32.gmra.mrb[4].mxu0 %vm294_vm1, %v1050_v44  ;;  %v2648_v1 = vsel %vm868_vm3, %v869_v62, %v870_v63  ;;  %v2657_v8 = vsel %vm868_vm3, %v870_v63, %v872_v0  ;;  %v880_v9 = vrot.slane %v2548_v23, 3  ;;  %v882_v10 = vrot.slane %v2557_v28, 3  ;;  %v1684_v50 = vld [vmem:[%s2914_s4] sm:$0xf] }
  0x1f   : > { %2189 = vmatprep.mubr.msk.f32.mxu1 %vm294_vm1, %v287_v47  ;;  %2274 = vmatprep.mubr.msk.f32.mxu0 %vm294_vm1, %v1052_v48  ;;  %v884_v13 = vrot.slane %v2580_v41, 3  ;;  %v2666_v15 = vsel %vm868_vm3, %v872_v0, %v874_v2  ;;  %v2669_v16 = vsel %vm868_vm3, %v874_v2, %v876_v3  ;;  %v2672_v19 = vsel %vm868_vm3, %v876_v3, %v878_v7 }
  0x20   : > { %v886_v20 = vrot.slane %v2583_v42, 3  ;;  %v2676_v21 = vsel %vm868_vm3, %v878_v7, %v880_v9  ;;  %v2679_v22 = vsel %vm868_vm3, %v880_v9, %v882_v10  ;;  %v1207_v27 = vrot.slane %v2663_v14, 4 }
  0x21   : > { %v2682_v24 = vsel %vm868_vm3, %v882_v10, %v884_v13  ;;  %v568_v30 = vrot.slane %v2515_v4, 2  ;;  %v1340_v33 = vrot.slane %v2528_v11, 5  ;;  %v573_v37 = vrot.slane %v2528_v11, 2 }
  0x22   : > { %2190 = vmatmul.mubr.msk.f32.gmra.mrb[6].mxu1 %vm294_vm1, %v289_v52  ;;  %2275 = vmatmul.mubr.msk.f32.gmra.mrb[6].mxu0 %vm294_vm1, %v1054_v53  ;;  %v2689_v26 = vsel %vm868_vm3, %v884_v13, %v886_v20  ;;  %v575_v43 = vrot.slane %v2531_v12, 2  ;;  %v577_v45 = vrot.slane %v2538_v17, 2  ;;  %v1348_v46 = vrot.slane %v2548_v23, 5 }
  0x23   : > { %2192 = vmatprep.mubr.msk.f32.mxu1 %vm294_vm1, %v291_v56  ;;  %2277 = vmatprep.mubr.msk.f32.mxu0 %vm294_vm1, %v1056_v57  ;;  %v579_v54 = vrot.slane %v2541_v18, 2  ;;  %v583_v62 = vrot.slane %v2557_v28, 2  ;;  %v1354_v63 = vrot.slane %v2583_v42, 5  ;;  %v585_v3 = vrot.slane %v2580_v41, 2 }
  0x24   : > { %v576_v52 = vsel %vm567_vm4, %v573_v37, %v575_v43  ;;  %v578_v56 = vsel %vm567_vm4, %v575_v43, %v577_v45  ;;  %v1356_v7 = vrot.slane %v2598_v51, 5  ;;  %v587_v13 = vrot.slane %v2583_v42, 2 }
  0x25   : > { %v1527_v43 = vrot.slane %v2663_v14, 6 }
  0x26   : > { %2193 = vmatmul.mubr.msk.f32.gmra.mrb[8].mxu1 %vm294_vm1, %v293_v58  ;;  %2278 = vmatmul.mubr.msk.f32.gmra.mrb[8].mxu0 %vm294_vm1, %v1058_v59  ;;  %v581_v58 = vrot.slane %v2548_v23, 2 }
  0x27   : > { %2197 = vmatprep.mubr.msk.f32.mxu1 %vm294_vm1, %v2515_v4  ;;  %2282 = vmatprep.mubr.msk.f32.mxu0 %vm294_vm1, %v1042_v25  ;;  %v888_v25 = vrot.slane %v2598_v51, 3  ;;  %v1208_v4 = vsel %vm1037_vm2, %v1057_v55, %v1207_v27  ;;  %v1350_v55 = vrot.slane %v2557_v28, 5  ;;  %v1357_v27 = vsel %vm1338_vm5, %v1354_v63, %v1356_v7 }
  0x28   : > { %v582_v0 = vsel %vm567_vm4, %v579_v54, %v581_v58  ;;  %v584_v9 = vsel %vm567_vm4, %v581_v58, %v583_v62 }
  0x2a   : > { %2198 = vmatmul.mubr.msk.f32.vlgmr.msra.gmra.mrb[0].mxu1 %vm294_vm1, %v2518_v5  ;;  %2283 = vmatmul.mubr.msk.f32.vlgmr.msra.gmra.mrb[0].mxu0 %vm294_vm1, %v1044_v29  ;;  %v2696_v29 = vsel %vm868_vm3, %v886_v20, %v888_v25  ;;  %v1358_v20 = vrot.slane %v2663_v14, 5  ;;  %v586_v25 = vsel %vm567_vm4, %v583_v62, %v585_v3 }
  0x2b   : > { %2213 = vmatpush3.msra.mxu1 %v1977_v31  ;;  %2298 = vmatpush3.msra.mxu0 %v2032_v32  ;;  %v569_v31 = vrot.slane %v2518_v5, 2  ;;  %v1339_v32 = vrot.slane %v2521_v6, 5  ;;  %v571_v5 = vrot.slane %v2521_v6, 2 }
  0x2c   : > { %2200 = vmatprep.mubr.msk.f32.mxu1 %vm294_vm1, %v2521_v6  ;;  %2285 = vmatprep.mubr.msk.f32.mxu0 %vm294_vm1, %v1046_v34  ;;  %v1342_v34 = vrot.slane %v2531_v12, 5 }
  0x2d   : > { %2229 = vmatprep.subr.mxu1 %v2629_v60  ;;  %2314 = vmatprep.subr.mxu0 %v2634_v61  ;;  %v570_v35 = vsel %vm567_vm4, %v568_v30, %v569_v31  ;;  %v1341_v36 = vsel %vm1338_vm5, %v1339_v32, %v1340_v33  ;;  %v572_v39 = vsel %vm567_vm4, %v569_v31, %v571_v5  ;;  %v1508_v30 = vrot.slane %v2521_v6, 6 }
  0x2e   : > { %2201 = vmatmul.mubr.msk.f32.gmra.mrb[2].mxu1 %vm294_vm1, %v2528_v11  ;;  %2286 = vmatmul.mubr.msk.f32.gmra.mrb[2].mxu0 %vm294_vm1, %v1048_v38  ;;  %v1344_v38 = vrot.slane %v2538_v17, 5  ;;  %v1343_v40 = vsel %vm1338_vm5, %v1340_v33, %v1342_v34  ;;  %v2729_v47 = vsel %vm567_vm4, %v571_v5, %v573_v37  ;;  %v1509_v31 = vrot.slane %v2528_v11, 6 }
  0x2f   : > { %2203 = vmatprep.mubr.msk.f32.mxu1 %vm294_vm1, %v2531_v12  ;;  %2288 = vmatprep.mubr.msk.f32.mxu0 %vm294_vm1, %v1050_v44  ;;  %v1346_v44 = vrot.slane %v2541_v18, 5  ;;  %v588_v32 = vsel %vm567_vm4, %v585_v3, %v587_v13  ;;  %v1359_v33 = vsel %vm1338_vm5, %v1356_v7, %v1358_v20  ;;  %v1513_v6 = vrot.slane %v2538_v17, 6 }
  0x30   : > { %v1510_v5 = vsel %vm1507_vm6, %v1508_v30, %v1509_v31 }
  0x32   : > { %2204 = vmatmul.mubr.msk.f32.gmra.mrb[4].mxu1 %vm294_vm1, %v2538_v17  ;;  %2289 = vmatmul.mubr.msk.f32.gmra.mrb[4].mxu0 %vm294_vm1, %v1052_v48  ;;  %v1345_v48 = vsel %vm1338_vm5, %v1342_v34, %v1344_v38  ;;  %v1515_v34 = vrot.slane %v2541_v18, 6 }
  0x33   : > { %2206 = vmatprep.mubr.msk.f32.mxu1 %vm294_vm1, %v2541_v18  ;;  %2291 = vmatprep.mubr.msk.f32.mxu0 %vm294_vm1, %v1054_v53  ;;  %v1347_v53 = vsel %vm1338_vm5, %v1344_v38, %v1346_v44 }
  0x34   : > { %v1516_v17 = vsel %vm1507_vm6, %v1513_v6, %v1515_v34 }
  0x36   : > { %2207 = vmatmul.mubr.msk.f32.gmra.mrb[6].mxu1 %vm294_vm1, %v2548_v23  ;;  %2292 = vmatmul.mubr.msk.f32.gmra.mrb[6].mxu0 %vm294_vm1, %v1056_v57  ;;  %v1349_v57 = vsel %vm1338_vm5, %v1346_v44, %v1348_v46  ;;  %v1674_v44 = vld [vmem:[%s2827_s24] sm:$0xff] }
  0x37   : > { %2209 = vmatprep.mubr.msk.f32.mxu1 %vm294_vm1, %v2557_v28  ;;  %2294 = vmatprep.mubr.msk.f32.mxu0 %vm294_vm1, %v1058_v59  ;;  %v1352_v59 = vrot.slane %v2580_v41, 5 }
  0x39   : > { %v1353_v2 = vsel %vm1338_vm5, %v1350_v55, %v1352_v59  ;;  %v1355_v10 = vsel %vm1338_vm5, %v1352_v59, %v1354_v63 }
  0x3a   : > { %2210 = vmatmul.mubr.msk.f32.gmra.mrb[8].mxu1 %vm294_vm1, %v2580_v41  ;;  %2295 = vmatmul.mubr.msk.f32.gmra.mrb[8].mxu0 %vm294_vm1, %v1208_v4  ;;  %v1511_v4 = vrot.slane %v2531_v12, 6 }
  0x3b   : > { %2214 = vmatprep.mubr.msk.f32.mxu1 %vm294_vm1, %v570_v35  ;;  %2299 = vmatprep.mubr.msk.f32.mxu0 %vm294_vm1, %v1341_v36  ;;  %v1517_v35 = vrot.slane %v2548_v23, 6  ;;  %v1519_v36 = vrot.slane %v2557_v28, 6  ;;  %v1521_v23 = vrot.slane %v2580_v41, 6  ;;  %v1523_v28 = vrot.slane %v2583_v42, 6 }
  0x3c   : > { %v1512_v11 = vsel %vm1507_vm6, %v1509_v31, %v1511_v4  ;;  %v1514_v12 = vsel %vm1507_vm6, %v1511_v4, %v1513_v6 }
  0x3d   : > { %v1518_v18 = vsel %vm1507_vm6, %v1515_v34, %v1517_v35  ;;  %v1520_v37 = vsel %vm1507_vm6, %v1517_v35, %v1519_v36  ;;  %v1522_v38 = vsel %vm1507_vm6, %v1519_v36, %v1521_v23  ;;  %v1524_v41 = vsel %vm1507_vm6, %v1521_v23, %v1523_v28 }
  0x3e   : > { %2215 = vmatmul.mubr.msk.f32.vlgmr.msra.gmra.mrb[0].mxu1 %vm294_vm1, %v572_v39  ;;  %2300 = vmatmul.mubr.msk.f32.vlgmr.msra.gmra.mrb[0].mxu0 %vm294_vm1, %v1343_v40  ;;  %v737_v40 = vrot.slane %v2598_v51, 2 }
  0x3f   : > { %2230 = vmatpush3.msra.mxu1 %v2629_v60  ;;  %2315 = vmatpush3.msra.mxu0 %v2634_v61  ;;  %v580_v60 = vsel %vm567_vm4, %v577_v45, %v579_v54  ;;  %v1351_v61 = vsel %vm1338_vm5, %v1348_v46, %v1350_v55  ;;  %v1675_v45 = vld [vmem:[%s2827_s24 + $0x8] sm:$0xff]  ;;  %v1676_v46 = vld [vmem:[%s2827_s24 + $0x10] sm:$0xff] }
  0x40   : > { %2217 = vmatprep.mubr.msk.f32.mxu1 %vm294_vm1, %v2729_v47  ;;  %2302 = vmatprep.mubr.msk.f32.mxu0 %vm294_vm1, %v1345_v48  ;;  %v1678_v48 = vld [vmem:[%s2827_s24 + $0x20] sm:$0xff] }
  0x41   : > { %2246 = vmatprep.subr.mxu1 %v1999_v49  ;;  %2331 = vmatprep.subr.msk.mxu0 %vm1037_vm2, %v1684_v50 }
  0x42   : > { %2218 = vmatmul.mubr.msk.f32.gmra.mrb[2].mxu1 %vm294_vm1, %v576_v52  ;;  %2303 = vmatmul.mubr.msk.f32.gmra.mrb[2].mxu0 %vm294_vm1, %v1347_v53 }
  0x43   : > { %2220 = vmatprep.mubr.msk.f32.mxu1 %vm294_vm1, %v578_v56  ;;  %2305 = vmatprep.mubr.msk.f32.mxu0 %vm294_vm1, %v1349_v57 }
  0x46   : > { %2221 = vmatmul.mubr.msk.f32.gmra.mrb[4].mxu1 %vm294_vm1, %v580_v60  ;;  %2306 = vmatmul.mubr.msk.f32.gmra.mrb[4].mxu0 %vm294_vm1, %v1351_v61 }
  0x47   : > { %2223 = vmatprep.mubr.msk.f32.mxu1 %vm294_vm1, %v582_v0  ;;  %2308 = vmatprep.mubr.msk.f32.mxu0 %vm294_vm1, %v1353_v2 }
  0x4a   : > { %2224 = vmatmul.mubr.msk.f32.gmra.mrb[6].mxu1 %vm294_vm1, %v584_v9  ;;  %2309 = vmatmul.mubr.msk.f32.gmra.mrb[6].mxu0 %vm294_vm1, %v1355_v10 }
  0x4b   : > { %2226 = vmatprep.mubr.msk.f32.mxu1 %vm294_vm1, %v586_v25  ;;  %2311 = vmatprep.mubr.msk.f32.mxu0 %vm294_vm1, %v1357_v27 }
  0x4e   : > { %2227 = vmatmul.mubr.msk.f32.gmra.mrb[8].mxu1 %vm294_vm1, %v588_v32  ;;  %2312 = vmatmul.mubr.msk.f32.gmra.mrb[8].mxu0 %vm294_vm1, %v1359_v33 }
  0x4f   : > { %2231 = vmatprep.mubr.msk.f32.mxu1 %vm294_vm1, %v572_v39  ;;  %2316 = vmatprep.mubr.msk.f32.mxu0 %vm294_vm1, %v1510_v5  ;;  %v1525_v39 = vrot.slane %v2598_v51, 6  ;;  %v738_v51 = vsel %vm567_vm4, %v587_v13, %v737_v40 }
  0x51   : > { %v1526_v42 = vsel %vm1507_vm6, %v1523_v28, %v1525_v39  ;;  %v1528_v14 = vsel %vm1507_vm6, %v1525_v39, %v1527_v43 }
  0x52   : > { %2232 = vmatmul.mubr.msk.f32.vlgmr.msra.gmra.mrb[0].mxu1 %vm294_vm1, %v2729_v47  ;;  %2317 = vmatmul.mubr.msk.f32.vlgmr.msra.gmra.mrb[0].mxu0 %vm294_vm1, %v1512_v11  ;;  %v1677_v47 = vld [vmem:[%s2827_s24 + $0x18] sm:$0xff] }
  0x53   : > { %2247 = vmatpush3.msra.mxu1 %v1999_v49  ;;  %2332 = vmatpush3.msk.msra.mxu0 %vm1037_vm2, %v1684_v50  ;;  %v2065_v49 = vld [vmem:[%s2912_s2] ss:$0 sm:$0xff] }
  0x54   : > { %2234 = vmatprep.mubr.msk.f32.mxu1 %vm294_vm1, %v576_v52  ;;  %2319 = vmatprep.mubr.msk.f32.mxu0 %vm294_vm1, %v1514_v12 }
  0x56   : > { %2235 = vmatmul.mubr.msk.f32.gmra.mrb[2].mxu1 %vm294_vm1, %v578_v56  ;;  %2320 = vmatmul.mubr.msk.f32.gmra.mrb[2].mxu0 %vm294_vm1, %v1516_v17 }
  0x57   : > { %2237 = vmatprep.mubr.msk.f32.mxu1 %vm294_vm1, %v580_v60  ;;  %2322 = vmatprep.mubr.msk.f32.mxu0 %vm294_vm1, %v1518_v18 }
  0x5a   : > { %2238 = vmatmul.mubr.msk.f32.gmra.mrb[4].mxu1 %vm294_vm1, %v582_v0  ;;  %2323 = vmatmul.mubr.msk.f32.gmra.mrb[4].mxu0 %vm294_vm1, %v1520_v37 }
  0x5b   : > { %2240 = vmatprep.mubr.msk.f32.mxu1 %vm294_vm1, %v584_v9  ;;  %2325 = vmatprep.mubr.msk.f32.mxu0 %vm294_vm1, %v1522_v38 }
  0x5e   : > { %2241 = vmatmul.mubr.msk.f32.gmra.mrb[6].mxu1 %vm294_vm1, %v586_v25  ;;  %2326 = vmatmul.mubr.msk.f32.gmra.mrb[6].mxu0 %vm294_vm1, %v1524_v41 }
  0x5f   : > { %2243 = vmatprep.mubr.msk.f32.mxu1 %vm294_vm1, %v588_v32  ;;  %2328 = vmatprep.mubr.msk.f32.mxu0 %vm294_vm1, %v1526_v42 }
  0x62   : > { %2244 = vmatmul.mubr.msk.f32.gmra.mrb[8].mxu1 %vm294_vm1, %v738_v51  ;;  %2329 = vmatmul.mubr.msk.f32.gmra.mrb[8].mxu0 %vm294_vm1, %v1528_v14 }
  0x63   : > { %2248 = vmatprep.mubr.msk.f32.mxu1 %vm294_vm1, %v2648_v1  ;;  %2333 = vmatprep.mubr.msk.f32.mxu0 %vm1685_vm7, %v1674_v44  ;;  %v1679_v1 = vld [vmem:[%s2827_s24 + $0x28] sm:$0xff] }
  0x66   : > { %2249 = vmatmul.mubr.msk.f32.vlgmr.msra.gmra.mrb[0].mxu1 %vm294_vm1, %v2657_v8  ;;  %2334 = vmatmul.mubr.msk.f32.vlgmr.msra.gmra.mrb[0].mxu0 %vm1685_vm7, %v1675_v45  ;;  %v1680_v8 = vld [vmem:[%s2827_s24 + $0x30] sm:$0xff] }
  0x67   : > { %2251 = vmatprep.mubr.msk.f32.mxu1 %vm294_vm1, %v2666_v15  ;;  %2336 = vmatprep.mubr.msk.f32.mxu0 %vm1685_vm7, %v1676_v46  ;;  %v1681_v15 = vld [vmem:[%s2827_s24 + $0x38] sm:$0xff] }
  0x6a   : > { %2252 = vmatmul.mubr.msk.f32.gmra.mrb[2].mxu1 %vm294_vm1, %v2669_v16  ;;  %2337 = vmatmul.mubr.msk.f32.gmra.mrb[2].mxu0 %vm1685_vm7, %v1677_v47  ;;  %v1682_v16 = vld [vmem:[%s2827_s24 + $0x40] sm:$0xff] }
  0x6b   : > { %2254 = vmatprep.mubr.msk.f32.mxu1 %vm294_vm1, %v2672_v19  ;;  %2339 = vmatprep.mubr.msk.f32.mxu0 %vm1685_vm7, %v1678_v48  ;;  %v1683_v19 = vld [vmem:[%s2827_s24 + $0x48] sm:$0xff] }
  0x6e   : > { %2255 = vmatmul.mubr.msk.f32.gmra.mrb[4].mxu1 %vm294_vm1, %v2676_v21  ;;  %2340 = vmatmul.mubr.msk.f32.gmra.mrb[4].mxu0 %vm1685_vm7, %v1679_v1 }
  0x6f   : > { %2257 = vmatprep.mubr.msk.f32.mxu1 %vm294_vm1, %v2679_v22  ;;  %2342 = vmatprep.mubr.msk.f32.mxu0 %vm1685_vm7, %v1680_v8 }
  0x72   : > { %2258 = vmatmul.mubr.msk.f32.gmra.mrb[6].mxu1 %vm294_vm1, %v2682_v24  ;;  %2343 = vmatmul.mubr.msk.f32.gmra.mrb[6].mxu0 %vm1685_vm7, %v1681_v15 }
  0x73   : > { %2260 = vmatprep.mubr.msk.f32.mxu1 %vm294_vm1, %v2689_v26  ;;  %2345 = vmatprep.mubr.msk.f32.mxu0 %vm1685_vm7, %v1682_v16 }
  0x76   : > { %2261 = vmatmul.mubr.msk.f32.gmra.mrb[8].mxu1 %vm294_vm1, %v2696_v29  ;;  %2346 = vmatmul.mubr.msk.f32.gmra.mrb[8].mxu0 %vm1685_vm7, %v1683_v19 }
 0x139   : > { %v2250_v21 = vpop.f32.mrb[0].mxu1  ;;  %v2335_v22 = vpop.f32.mrb[0].mxu0 }
 0x13a   : > { %v2348_v24 = vadd.f32 %v2335_v22, %v2250_v21  ;;  %v976_v50 = vpop.f32.mrb[1].mxu1  ;;  %v1785_v52 = vpop.f32.mrb[1].mxu0 }
 0x13b   : > { %v2349_v53 = vadd.f32 %v1785_v52, %v976_v50 }
 0x13c   : > { %v1852_v54 = vadd.f32 %v2348_v24, %v2065_v49 }
 0x13d   : > { %v1851_v26 = vadd.f32 %v2349_v53, %v2065_v49  ;;  %v2253_v29 = vpop.f32.mrb[2].mxu1  ;;  %v2338_v55 = vpop.f32.mrb[2].mxu0 }
 0x13e   : > { %v1862_v56 = vmax.f32 %v1852_v54, 0.0  ;;  %v2350_v57 = vadd.f32 %v2338_v55, %v2253_v29  ;;  %v986_v58 = vpop.f32.mrb[3].mxu1  ;;  %v1795_v59 = vpop.f32.mrb[3].mxu0 }
 0x13f   : > { %v1861_v60 = vmax.f32 %v1851_v26, 0.0  ;;  %v2351_v61 = vadd.f32 %v1795_v59, %v986_v58 }
 0x140   : > { %1872 = vst.msk [vmem:[%s2885_s29 + $0x8] sm:$0xff] %vm294_vm1, %v1862_v56  ;;  %v1854_v62 = vadd.f32 %v2350_v57, %v2065_v49 }
 0x141   : > { %1871 = vst.msk [vmem:[%s2885_s29] sm:$0xff] %vm294_vm1, %v1861_v60  ;;  %v1853_v63 = vadd.f32 %v2351_v61, %v2065_v49  ;;  %v2256_v0 = vpop.f32.mrb[4].mxu1  ;;  %v2341_v2 = vpop.f32.mrb[4].mxu0 }
 0x142   : > { %v1864_v3 = vmax.f32 %v1854_v62, 0.0  ;;  %v2352_v7 = vadd.f32 %v2341_v2, %v2256_v0  ;;  %v996_v9 = vpop.f32.mrb[5].mxu1  ;;  %v1805_v10 = vpop.f32.mrb[5].mxu0 }
 0x143   : > { %v1863_v13 = vmax.f32 %v1853_v63, 0.0  ;;  %v2353_v20 = vadd.f32 %v1805_v10, %v996_v9 }
 0x144   : > { %1874 = vst.msk [vmem:[%s2885_s29 + $0x18] sm:$0xff] %vm294_vm1, %v1864_v3  ;;  %v1856_v25 = vadd.f32 %v2352_v7, %v2065_v49 }
 0x145   : > { %1873 = vst.msk [vmem:[%s2885_s29 + $0x10] sm:$0xff] %vm294_vm1, %v1863_v13  ;;  %v1855_v27 = vadd.f32 %v2353_v20, %v2065_v49  ;;  %v2259_v30 = vpop.f32.mrb[6].mxu1  ;;  %v2344_v31 = vpop.f32.mrb[6].mxu0 }
 0x146   : > { %v1866_v32 = vmax.f32 %v1856_v25, 0.0  ;;  %v2354_v33 = vadd.f32 %v2344_v31, %v2259_v30  ;;  %v1006_v4 = vpop.f32.mrb[7].mxu1  ;;  %v1815_v5 = vpop.f32.mrb[7].mxu0 }
 0x147   : > { %v1865_v6 = vmax.f32 %v1855_v27, 0.0  ;;  %v2355_v11 = vadd.f32 %v1815_v5, %v1006_v4 }
 0x148   : > { %1876 = vst.msk [vmem:[%s2885_s29 + $0x28] sm:$0xff] %vm294_vm1, %v1866_v32  ;;  %v1858_v34 = vadd.f32 %v2354_v33, %v2065_v49 }
 0x149   : > { %1875 = vst.msk [vmem:[%s2885_s29 + $0x20] sm:$0xff] %vm294_vm1, %v1865_v6  ;;  %v1857_v35 = vadd.f32 %v2355_v11, %v2065_v49  ;;  %v2262_v12 = vpop.f32.mrb[8].mxu1  ;;  %v2347_v17 = vpop.f32.mrb[8].mxu0 }
 0x14a   : > { %v1868_v36 = vmax.f32 %v1858_v34, 0.0  ;;  %v2356_v18 = vadd.f32 %v2347_v17, %v2262_v12  ;;  %v1016_v23 = vpop.f32.mrb[9].mxu1  ;;  %v1825_v37 = vpop.f32.mrb[9].mxu0 }
 0x14b   : > { %v1867_v28 = vmax.f32 %v1857_v35, 0.0  ;;  %v2357_v38 = vadd.f32 %v1825_v37, %v1016_v23 }
 0x14c   : > { %1878 = vst.msk [vmem:[%s2885_s29 + $0x38] sm:$0xff] %vm294_vm1, %v1868_v36  ;;  %v1860_v39 = vadd.f32 %v2356_v18, %v2065_v49 }
 0x14d   : > { %1877 = vst.msk [vmem:[%s2885_s29 + $0x30] sm:$0xff] %vm294_vm1, %v1867_v28  ;;  %v1859_v41 = vadd.f32 %v2357_v38, %v2065_v49 }
 0x14e   : > { %v1870_v40 = vmax.f32 %v1860_v39, 0.0 }
 0x14f   : > { %v1869_v43 = vmax.f32 %v1859_v41, 0.0 }
 0x150   : > { %1880 = vst.msk [vmem:[%s2885_s29 + $0x48] sm:$0xff] %vm294_vm1, %v1870_v40 }
 0x151   : > { %1879 = vst.msk [vmem:[%s2885_s29 + $0x40] sm:$0xff] %vm294_vm1, %v1869_v43 }
 0x152 PF: > { %s15_s18 = sadd.s32 1, %s2454_s18  }
 0x153   : > { %p12_p4 = scmp.ge.s32.totalorder %s15_s18, 4  }
 0x155   :  { %14 = sbr.rel (!%p12_p4) target bundleno = 1 (0x1), region = 81 }

</bundles_post_ra>
